<compile_context>
chip_gen: v6e
topology: v6e:2x2x1
jax: 0.10.0
libtpu: 0.0.40
codegen_flags: <defaults>
</compile_context>

<pallas_src>
import functools

import jax
import jax.numpy as jnp
from jax.experimental import pallas as pl
from jax.experimental.pallas import tpu as pltpu

LANES = 128
MAX_BLOCK_ROWS = 1024  # 1024*128*4B = 512 KiB per f32 plane per block


# --------------------------------------------------------------------------
# Kernels
# --------------------------------------------------------------------------
def _csoftplus_complex_kernel(xr_ref, xi_ref, or_ref, oi_ref, *,
                              beta, threshold_sq, inv_beta):
    ar = beta * xr_ref[...].astype(jnp.float32)
    ai = beta * xi_ref[...].astype(jnp.float32)

    # |arg| > threshold  <=>  |arg|^2 > threshold^2  (no sqrt needed).
    big = (ar * ar + ai * ai) > threshold_sq

    # Guard exp against overflow on the pass-through branch.
    ar_s = jnp.where(big, 0.0, ar)
    ai_s = jnp.where(big, 0.0, ai)

    # complex exp(arg) = exp(ar) * (cos(ai) + i sin(ai))
    ea = jnp.exp(ar_s)
    wr = 1.0 + ea * jnp.cos(ai_s)   # w = 1 + exp(arg)
    wi = ea * jnp.sin(ai_s)

    # complex log(w) = 0.5*log(|w|^2) + i*atan2(Im, Re)
    # (f32-safe for the default threshold=20; wr^2+wi^2 overflows ~threshold>44)
    lr = 0.5 * jnp.log(wr * wr + wi * wi)
    li = jnp.arctan2(wi, wr)

    or_ref[...] = jnp.where(big, ar, inv_beta * lr).astype(or_ref.dtype)
    oi_ref[...] = jnp.where(big, ai, inv_beta * li).astype(oi_ref.dtype)


def _csoftplus_real_kernel(x_ref, o_ref, *, beta, threshold, inv_beta):
    # Cast to f32 inside the kernel (input stays in its native dtype in HBM).
    a = beta * x_ref[...].astype(jnp.float32)
    big = jnp.abs(a) > threshold
    a_s = jnp.where(big, 0.0, a)
    soft = inv_beta * jnp.log(1.0 + jnp.exp(a_s))
    o_ref[...] = jnp.where(big, a, soft).astype(o_ref.dtype)


# --------------------------------------------------------------------------
# Tiling helpers (all static Python arithmetic under jit)
# --------------------------------------------------------------------------
def _round_up(x, m):
    return ((x + m - 1) // m) * m


def _blocking(n_elems, itemsize):
    """Pick (rows_pad, block_rows, num_blocks) for a flat array of n_elems."""
    sub = max(8, 32 // itemsize)            # f32: 8, bf16/f16: 16, 8-bit: 32
    rows = pl.cdiv(max(n_elems, 1), LANES)
    rows_s = _round_up(rows, sub)
    # Number of blocks first -> bounded padding (< 2 sublane tiles of rows).
    num_blocks = pl.cdiv(rows_s, MAX_BLOCK_ROWS)
    if rows_s >= 2 * sub:
        # Give v7x's two TensorCores independent work (grid >= 2).
        num_blocks = max(num_blocks, 2)
    block_rows = _round_up(pl.cdiv(rows_s, num_blocks), sub)
    rows_pad = num_blocks * block_rows
    return rows_pad, block_rows, num_blocks


def _to_slab(x_flat, rows_pad):
    """Reshape a flat vector to a lane-dense (rows_pad, 128) slab.

    The pad is statically skipped when the size is already aligned, so no
    extra HBM pass is emitted for aligned shapes.
    """
    pad = rows_pad * LANES - x_flat.shape[0]
    if pad:
        x_flat = jnp.pad(x_flat, (0, pad))
    return x_flat.reshape(rows_pad, LANES)


def _from_slab(slab, n, shape):
    flat = slab.reshape(-1)
    if flat.shape[0] != n:        # static: only slice if we actually padded
        flat = flat[:n]
    return flat.reshape(shape)


# --------------------------------------------------------------------------
# Public wrapper
# --------------------------------------------------------------------------
@functools.partial(jax.jit, static_argnames=("beta", "threshold"))
def complex_softplus(x, beta: float = 1.0, threshold: float = 20.0):
    """Pallas implementation of ComplexSoftplus.forward.

    complex input -> complex64 output; real input -> same-dtype output.
    """
    beta = float(beta)
    threshold = float(threshold)
    inv_beta = 1.0 / beta
    orig_shape = x.shape
    n = x.size

    if jnp.iscomplexobj(x):
        if x.dtype != jnp.complex64:
            # TPU has no f64 vector support; complex128 runs as complex64.
            x = x.astype(jnp.complex64)

        xr = jnp.real(x).reshape(-1)    # already float32, no astype pass
        xi = jnp.imag(x).reshape(-1)
        rows_pad, block_rows, num_blocks = _blocking(n, 4)
        xr_s = _to_slab(xr, rows_pad)
        xi_s = _to_slab(xi, rows_pad)

        kernel = functools.partial(
            _csoftplus_complex_kernel,
            beta=beta, threshold_sq=threshold * threshold, inv_beta=inv_beta)

        block = pl.BlockSpec((block_rows, LANES), lambda i: (i, 0))
        n_pad_elems = rows_pad * LANES
        cost = pl.CostEstimate(
            flops=20 * n_pad_elems,
            transcendentals=5 * n_pad_elems,
            bytes_accessed=16 * n_pad_elems)

        out_r, out_i = pl.pallas_call(
            kernel,
            out_shape=(
                jax.ShapeDtypeStruct((rows_pad, LANES), jnp.float32),
                jax.ShapeDtypeStruct((rows_pad, LANES), jnp.float32),
            ),
            grid=(num_blocks,),
            in_specs=[block, block],
            out_specs=(block, block),
            compiler_params=pltpu.CompilerParams(
                dimension_semantics=("parallel",)),
            cost_estimate=cost,
        )(xr_s, xi_s)

        out_r = _from_slab(out_r, n, orig_shape)
        out_i = _from_slab(out_i, n, orig_shape)
        return jax.lax.complex(out_r, out_i)

    # ---- real-input fast path: 1 plane, native dtype end-to-end, no
    #      cos/sin/atan2, f32 math inside the kernel only.
    if x.dtype == jnp.float64:
        x = x.astype(jnp.float32)       # TPU: no f64 vector math
    dtype = x.dtype
    itemsize = jnp.dtype(dtype).itemsize
    xf = x.reshape(-1)
    rows_pad, block_rows, num_blocks = _blocking(n, itemsize)
    xs = _to_slab(xf, rows_pad)

    kernel = functools.partial(
        _csoftplus_real_kernel, beta=beta, threshold=threshold,
        inv_beta=inv_beta)

    block = pl.BlockSpec((block_rows, LANES), lambda i: (i, 0))
    n_pad_elems = rows_pad * LANES
    cost = pl.CostEstimate(
        flops=8 * n_pad_elems,
        transcendentals=2 * n_pad_elems,
        bytes_accessed=2 * itemsize * n_pad_elems)

    out = pl.pallas_call(
        kernel,
        out_shape=jax.ShapeDtypeStruct((rows_pad, LANES), dtype),
        grid=(num_blocks,),
        in_specs=[block],
        out_specs=block,
        compiler_params=pltpu.CompilerParams(
            dimension_semantics=("parallel",)),
        cost_estimate=cost,
    )(xs)

    return _from_slab(out, n, orig_shape)


# --------------------------------------------------------------------------
# Pure-JAX reference (identical semantics, for validation)
# --------------------------------------------------------------------------
def _reference(x, beta=1.0, threshold=20.0):
    arg = beta * x
    mask = jnp.abs(arg) > threshold
    safe_arg = jnp.where(mask, jnp.zeros_like(arg), arg)
    soft = jnp.log(1.0 + jnp.exp(safe_arg)) / beta
    return jnp.where(mask, arg, soft)


if __name__ == "__main__":
    # ComplexSoftplus(beta=1, threshold=20) on a small NCHW complex tensor.
    beta, threshold = 1.0, 20.0

    key = jax.random.PRNGKey(0)
    kr, ki = jax.random.split(key)
    shape = (2, 4, 16, 16)
    x = jax.lax.complex(
        jax.random.normal(kr, shape, dtype=jnp.float32),
        jax.random.normal(ki, shape, dtype=jnp.float32),
    )
    # Make sure both branches (|arg| > threshold and <= threshold) are hit.
    x = x.at[0, 0, 0, 0].set(25.0 + 3.0j)
    x = x.at[1, 3, 5, 7].set(-30.0 - 2.0j)

    out = jax.block_until_ready(complex_softplus(x, beta=beta, threshold=threshold))
    ref = _reference(x, beta=beta, threshold=threshold)
    assert out.shape == x.shape and out.dtype == jnp.complex64
    assert jnp.allclose(out, ref, rtol=1e-5, atol=1e-5), "complex mismatch vs reference"

    # Unaligned size -> exercises the (static) pad + slice path.
    xu = jax.lax.complex(
        jax.random.normal(kr, (3, 5, 7), dtype=jnp.float32),
        jax.random.normal(ki, (3, 5, 7), dtype=jnp.float32),
    )
    out_u = jax.block_until_ready(complex_softplus(xu, beta=beta, threshold=threshold))
    assert jnp.allclose(out_u, _reference(xu, beta, threshold),
                        rtol=1e-5, atol=1e-5), "unaligned complex mismatch"

    # Real-input fast path (f32, native dtype end-to-end).
    xr = jax.random.normal(kr, shape, dtype=jnp.float32) * 15.0
    xr = xr.at[0, 0, 0, 1].set(35.0)
    out_r = jax.block_until_ready(complex_softplus(xr, beta=beta, threshold=threshold))
    ref_r = _reference(xr, beta=beta, threshold=threshold)
    assert out_r.shape == xr.shape and out_r.dtype == jnp.float32
    assert jnp.allclose(out_r, ref_r, rtol=1e-5, atol=1e-5), "real mismatch vs reference"

    # bf16 real input stays bf16 through the kernel (no wrapper upcast pass).
    xb = (jax.random.normal(ki, shape, dtype=jnp.float32) * 5.0).astype(jnp.bfloat16)
    out_b = jax.block_until_ready(complex_softplus(xb, beta=beta, threshold=threshold))
    assert out_b.shape == xb.shape and out_b.dtype == jnp.bfloat16
    assert jnp.allclose(out_b.astype(jnp.float32),
                        _reference(xb.astype(jnp.float32), beta, threshold),
                        rtol=2e-2, atol=2e-2), "bf16 mismatch vs reference"

    print("KERNEL_OK")
</pallas_src>

<mosaic_0001>
module attributes {stable_mosaic.version = 11 : i64} {
  func.func @_csoftplus_complex_kernel(%arg0: i32, %arg1: memref<8x128xf32, #tpu.memory_space<vmem>>, %arg2: memref<8x128xf32, #tpu.memory_space<vmem>>, %arg3: memref<8x128xf32, #tpu.memory_space<vmem>>, %arg4: memref<8x128xf32, #tpu.memory_space<vmem>>) attributes {dimension_semantics = [#tpu.dimension_semantics<parallel>], iteration_bounds = array<i64: 2>, scalar_prefetch = 0 : i64, scratch_operands = 0 : i64, tpu.core_type = #tpu.core_type<tc>, window_params = [{transform_indices = @transform_0, window_bounds = array<i64: 8, 128>}, {transform_indices = @transform_1, window_bounds = array<i64: 8, 128>}, {transform_indices = @transform_2, window_bounds = array<i64: 8, 128>}, {transform_indices = @transform_3, window_bounds = array<i64: 8, 128>}]} {
    %c0 = arith.constant 0 : index
    %c0_0 = arith.constant 0 : index
    %0 = vector.load %arg1[%c0, %c0_0] : memref<8x128xf32, #tpu.memory_space<vmem>>, vector<8x128xf32>
    %cst = arith.constant 1.000000e+00 : f32
    %1 = vector.broadcast %cst : f32 to vector<8x128xf32>
    %2 = arith.mulf %1, %0 : vector<8x128xf32>
    %c0_1 = arith.constant 0 : index
    %c0_2 = arith.constant 0 : index
    %3 = vector.load %arg2[%c0_1, %c0_2] : memref<8x128xf32, #tpu.memory_space<vmem>>, vector<8x128xf32>
    %cst_3 = arith.constant 1.000000e+00 : f32
    %4 = vector.broadcast %cst_3 : f32 to vector<8x128xf32>
    %5 = arith.mulf %4, %3 : vector<8x128xf32>
    %6 = arith.mulf %2, %2 : vector<8x128xf32>
    %7 = arith.mulf %5, %5 : vector<8x128xf32>
    %8 = arith.addf %6, %7 : vector<8x128xf32>
    %cst_4 = arith.constant 4.000000e+02 : f32
    %9 = vector.broadcast %cst_4 : f32 to vector<8x128xf32>
    %10 = arith.cmpf ogt, %8, %9 : vector<8x128xf32>
    %cst_5 = arith.constant 0.000000e+00 : f32
    %11 = vector.broadcast %cst_5 : f32 to vector<8x128xf32>
    %12 = arith.select %10, %11, %2 : vector<8x128xi1>, vector<8x128xf32>
    %cst_6 = arith.constant 0.000000e+00 : f32
    %13 = vector.broadcast %cst_6 : f32 to vector<8x128xf32>
    %14 = arith.select %10, %13, %5 : vector<8x128xi1>, vector<8x128xf32>
    %15 = math.exp %12 : vector<8x128xf32>
    %16 = math.cos %14 : vector<8x128xf32>
    %17 = arith.mulf %15, %16 : vector<8x128xf32>
    %cst_7 = arith.constant 1.000000e+00 : f32
    %18 = vector.broadcast %cst_7 : f32 to vector<8x128xf32>
    %19 = arith.addf %18, %17 : vector<8x128xf32>
    %20 = math.sin %14 : vector<8x128xf32>
    %21 = arith.mulf %15, %20 : vector<8x128xf32>
    %22 = arith.mulf %19, %19 : vector<8x128xf32>
    %23 = arith.mulf %21, %21 : vector<8x128xf32>
    %24 = arith.addf %22, %23 : vector<8x128xf32>
    %25 = math.log %24 : vector<8x128xf32>
    %cst_8 = arith.constant 5.000000e-01 : f32
    %26 = vector.broadcast %cst_8 : f32 to vector<8x128xf32>
    %27 = arith.mulf %26, %25 : vector<8x128xf32>
    %28 = math.atan2 %21, %19 : vector<8x128xf32>
    %cst_9 = arith.constant 1.000000e+00 : f32
    %29 = vector.broadcast %cst_9 : f32 to vector<8x128xf32>
    %30 = arith.mulf %29, %27 : vector<8x128xf32>
    %31 = arith.select %10, %2, %30 : vector<8x128xi1>, vector<8x128xf32>
    %c0_10 = arith.constant 0 : index
    %c0_11 = arith.constant 0 : index
    %32 = vector.load %arg3[%c0_10, %c0_11] : memref<8x128xf32, #tpu.memory_space<vmem>>, vector<8x128xf32>
    tpu.vector_store %arg3[%c0_10, %c0_11], %31 {strides = array<i32>} : memref<8x128xf32, #tpu.memory_space<vmem>>, vector<8x128xf32>,
    %cst_12 = arith.constant 1.000000e+00 : f32
    %33 = vector.broadcast %cst_12 : f32 to vector<8x128xf32>
    %34 = arith.mulf %33, %28 : vector<8x128xf32>
    %35 = arith.select %10, %5, %34 : vector<8x128xi1>, vector<8x128xf32>
    %c0_13 = arith.constant 0 : index
    %c0_14 = arith.constant 0 : index
    %36 = vector.load %arg4[%c0_13, %c0_14] : memref<8x128xf32, #tpu.memory_space<vmem>>, vector<8x128xf32>
    tpu.vector_store %arg4[%c0_13, %c0_14], %35 {strides = array<i32>} : memref<8x128xf32, #tpu.memory_space<vmem>>, vector<8x128xf32>,
    return
  }
  func.func @transform_0(%arg0: i32) -> (i32, i32) {
    %c0_i32 = arith.constant 0 : i32
    %c0_i32_0 = arith.constant 0 : i32
    return %arg0, %c0_i32 : i32, i32
  }
  func.func @transform_1(%arg0: i32) -> (i32, i32) {
    %c0_i32 = arith.constant 0 : i32
    %c0_i32_0 = arith.constant 0 : i32
    return %arg0, %c0_i32 : i32, i32
  }
  func.func @transform_2(%arg0: i32) -> (i32, i32) {
    %c0_i32 = arith.constant 0 : i32
    %c0_i32_0 = arith.constant 0 : i32
    return %arg0, %c0_i32 : i32, i32
  }
  func.func @transform_3(%arg0: i32) -> (i32, i32) {
    %c0_i32 = arith.constant 0 : i32
    %c0_i32_0 = arith.constant 0 : i32
    return %arg0, %c0_i32 : i32, i32
  }
}

</mosaic_0001>

<bundles_post_ra>
// kernel: custom-call.1
= control target key start
LH: loop header
LB: loop body
LE: loop exit
PB: predicated region body
PF: predicated region fallthrough
CT: control target
= control target key end

     0   :  { %s51_s0 = inlined_call_operand.hbm [shape: c64[2,4,16,16], index: 0, kind: input, shape index: {}]   ;;  %s52_s1 = inlined_call_operand.vmem [shape: f32[2,4,16,16], index: 1, kind: output, shape index: {}]  }
   0x1   :  { %s2_s8 = scalar_lea.hbm %s51_s0, 2048 }
   0x2   :  { %3 = vsyncpa [#allocation0], 0  ;;  %s4_s11 = sshll.u32 %s52_s1, 4  ;;  %s5_s11 = int_to_ptr.vmem [resolvable:$true] %s4_s11 }
   0x3   :  { %s20_s12 = scalar_lea.vmem %s5_s11, 2048  ;;  %p25_p1 = scmp.lt.s32.totalorder %s5_s11, %s5_s11 }
   0x4   :  { %p21_p0 = scmp.ne.s32.totalorder %s5_s11, %s20_s12  ;;  %p26_p2 = scmp.lt.s32.totalorder %s20_s12, %s20_s12 }
   0x6   :  { %p27_p3 = por %p26_p2, %p25_p1 }
   0x8   :  { %p28_p4 = pnand %p27_p3, %p21_p0 }
   0xa   :  { %31 = shalt.err (!%p28_p4)  }
   0xb   :  { %7 = dma.hbm_to_vmem [thread:$0]  %s2_s8, 2048, %s5_s11, [#allocation0] }
   0xc   :  { %33 = dma.done.wait [#allocation0], 2048  }
   0xd   :  { %34 = vsyncadd [#allocation0], 4294965248 }
   0xe   :  { %9 = vsyncpa [#allocation0], 1 }

// kernel: custom-call
= control target key start
LH: loop header
LB: loop body
LE: loop exit
PB: predicated region body
PF: predicated region fallthrough
CT: control target
= control target key end

     0   :  { %2 = vsyncpa [#allocation0], 0  ;;  %s47_s0 = inlined_call_operand.hbm [shape: c64[2,4,16,16], index: 0, kind: input, shape index: {}]   ;;  %s48_s1 = inlined_call_operand.vmem [shape: f32[2,4,16,16], index: 1, kind: output, shape index: {}]  }
   0x1   :  { %s3_s8 = sshll.u32 %s48_s1, 4  ;;  %s4_s8 = int_to_ptr.vmem [resolvable:$true] %s3_s8 }
   0x2   :  { %s17_s9 = scalar_lea.vmem %s4_s8, 2048  ;;  %p22_p1 = scmp.lt.s32.totalorder %s4_s8, %s4_s8 }
   0x3   :  { %p18_p0 = scmp.ne.s32.totalorder %s4_s8, %s17_s9  ;;  %p23_p2 = scmp.lt.s32.totalorder %s17_s9, %s17_s9 }
   0x5   :  { %p24_p3 = por %p23_p2, %p22_p1 }
   0x7   :  { %p25_p4 = pnand %p24_p3, %p18_p0 }
   0x9   :  { %28 = shalt.err (!%p25_p4)  }
   0xa   :  { %6 = dma.hbm_to_vmem [thread:$0]  %s47_s0, 2048, %s4_s8, [#allocation0] }
   0xb   :  { %29 = dma.done.wait [#allocation0], 2048  }
   0xc   :  { %30 = vsyncadd [#allocation0], 4294965248 }
   0xd   :  { %8 = vsyncpa [#allocation0], 1 }

// kernel: custom-call.2
= control target key start
LH: loop header
LB: loop body
LE: loop exit
PB: predicated region body
PF: predicated region fallthrough
CT: control target
= control target key end

     0   :  { %s92_s0 = inlined_call_operand.vmem [shape: f32[2,4,16,16], index: 0, kind: input, shape index: {}]   ;;  %s93_s1 = inlined_call_operand.vmem [shape: f32[2,4,16,16], index: 1, kind: input, shape index: {}]   ;;  %s94_s2 = inlined_call_operand.hbm [shape: c64[2,4,16,16], index: 2, kind: output, shape index: {}]  }
   0x1   :  { %s3_s11 = scalar_lea.hbm %s94_s2, 2048 }
   0x2   :  { %4 = vsyncpa [#allocation0], 0  ;;  %s5_s14 = sshll.u32 %s92_s0, 4  ;;  %s6_s14 = int_to_ptr.vmem [resolvable:$true] %s5_s14 }
   0x3   :  { %s18_s15 = scalar_lea.vmem %s6_s14, 2048  ;;  %p23_p1 = scmp.lt.s32.totalorder %s6_s14, %s6_s14 }
   0x4   :  { %p19_p0 = scmp.ne.s32.totalorder %s6_s14, %s18_s15  ;;  %p24_p2 = scmp.lt.s32.totalorder %s18_s15, %s18_s15 }
   0x6   :  { %p25_p3 = por %p24_p2, %p23_p1 }
   0x8   :  { %p26_p4 = pnand %p25_p3, %p19_p0 }
   0xa   :  { %29 = shalt.err (!%p26_p4)  }
   0xb   :  { %8 = dma.vmem_to_hbm [thread:$0]  %s6_s14, 2048, %s94_s2, [#allocation0] }
   0xc   :  { %61 = dma.done.wait [#allocation0], 2048  }
   0xd   :  { %62 = vsyncadd [#allocation0], 4294965248 }
   0xe   :  { %10 = vsyncpa [#allocation0], 1 }
   0xf   :  { %11 = vsyncpa [#allocation1], 0  ;;  %s12_s0 = sshll.u32 %s93_s1, 4  ;;  %s13_s0 = int_to_ptr.vmem [resolvable:$true] %s12_s0 }
  0x10   :  { %s38_s20 = scalar_lea.vmem %s13_s0, 2048  ;;  %p43_p6 = scmp.lt.s32.totalorder %s13_s0, %s13_s0 }
  0x11   :  { %p39_p5 = scmp.ne.s32.totalorder %s13_s0, %s38_s20  ;;  %p44_p7 = scmp.lt.s32.totalorder %s38_s20, %s38_s20 }
  0x13   :  { %p45_p8 = por %p44_p7, %p43_p6 }
  0x15   :  { %p46_p9 = pnand %p45_p8, %p39_p5 }
  0x17   :  { %49 = shalt.err (!%p46_p9)  }
  0x18   :  { %15 = dma.vmem_to_hbm [thread:$0]  %s13_s0, 2048, %s3_s11, [#allocation1] }
  0x19   :  { %63 = dma.done.wait [#allocation1], 2048  }
  0x1a   :  { %64 = vsyncadd [#allocation1], 4294965248 }
  0x1b   :  { %17 = vsyncpa [#allocation1], 1 }

// kernel: complex_softplus.1
= control target key start
LH: loop header
LB: loop body
LE: loop exit
PB: predicated region body
PF: predicated region fallthrough
CT: control target
= control target key end

     0   :  { %s652_s12 = smov 0   ;;  %s725_s0 = inlined_call_operand.vmem [shape: f32[16,128], index: 0, kind: input, shape index: {}]   ;;  %s726_s1 = inlined_call_operand.vmem [shape: f32[16,128], index: 1, kind: input, shape index: {}]   ;;  %s727_s2 = inlined_call_operand.vmem [shape: f32[16,128], index: 2, kind: output, shape index: {0}]   ;;  %s728_s3 = inlined_call_operand.vmem [shape: f32[16,128], index: 3, kind: output, shape index: {1}]  }
   0x1 LB: > { %s567_s13 = sadd.s32 4294967295, %s622_s12   ;;  %p571_p0 = scmp.ge.s32.totalorder %s622_s12, 1  ;;  %s622_s12 = sphi %s652_s12, %s14_s12  }
   0x2   : > { %p148_p1 = scmp.lt.s32.totalorder %s622_s12, 3 }
   0x4   : > { %p149_p2 = pnand %p571_p0, %p148_p1 }
   0x5   : > { %p178_p3 = scmp.lt.s32.totalorder (!%p149_p2), %s567_s13, 1 }
   0x6   : > { %152 = sbr.rel (%p149_p2) target bundleno = 181 (0xb5), region = 28 }
   0xb   : > { %s730_s13 = smov (!%p178_p3, %s567_s13), 1  ;;  %v624_v17 = vmov 683565275   ;;  %v625_v19 = vmov 2475754826  }
   0xc   : > { %s660_s14 = sshll.u32 %s730_s13, 3  ;;  %v626_v21 = vmov 2131351028   ;;  %v627_v23 = vmov 2102212464  }
   0xd   : > { %s181_s17 = scalar_lea.vmem %s725_s0, %s660_s14  ;;  %s185_s20 = scalar_lea.vmem %s726_s1, %s660_s14  ;;  %v628_v25 = vmov 920167782   ;;  %v629_v32 = vmov 1326507024  }
   0xe   : > { %v670_v0 = vld [vmem:[%s181_s17] sm:$0xff]  ;;  %s189_s23 = scalar_lea.vmem %s727_s2, %s660_s14  ;;  %s193_s26 = scalar_lea.vmem %s728_s3, %s660_s14 }
   0xf   : > { %v672_v1 = vld [vmem:[%s185_s20] sm:$0xff]  ;;  %v196_v2 = vmul.f32 %v670_v0, %v670_v0 }
  0x10   : > { %v197_v3 = vmul.f32 %v672_v1, %v672_v1 }
  0x12   : > { %v678_v4 = vadd.f32 %v197_v3, %v196_v2 }
  0x14   : > { %vm199_vm0 = vcmp.gt.f32.partialorder %v678_v4, 400.0 }
  0x15   : > { %v684_v5 = vsel %vm199_vm0, 0.0, %v672_v1 }
  0x16   : > { %v207_v6 = vand.u32 2139095040, %v684_v5  ;;  %v204_v8 = vand.u32 2147483647, %v684_v5  ;;  %vm206_vm8 = vcmp.lt.s32.totalorder %v684_v5, 0 }
  0x18   : > { %v208_v7 = vshrl.u32 %v207_v6, 23  ;;  %v211_v11 = vand.u32 8388607, %v204_v8  ;;  %vm205_vm9 = vcmp.le.f32.partialorder %v204_v8, 0.7853982 }
  0x1a   : > { %v576_v9 = vadd.s32 4294967169, %v208_v7  ;;  %v212_v14 = vor.u32 8388608, %v211_v11 }
  0x1c   : > { %v214_v10 = vadd.s32 1, %v576_v9  ;;  %v252_v34 = vshll.u32 %v212_v14, 8 }
  0x1e   : > { %vm215_vm1 = vcmp.gt.s32.totalorder %v214_v10, 0 }
  0x1f   : > { %v216_v12 = vsel %vm215_vm1, %v214_v10, 0  ;;  %vm296_vm1 = vweird.f32 %v684_v5 }
  0x20   : > { %v218_v13 = vand.u32 31, %v216_v12  ;;  %v217_v15 = vshrl.u32 %v216_v12, 5 }
  0x22   : > { %v219_v16 = vsub.s32 32, %v218_v13  ;;  %v221_v18 = vshll.u32 %v624_v17, %v218_v13  ;;  %v224_v20 = vshll.u32 %v625_v19, %v218_v13  ;;  %v227_v22 = vshll.u32 %v626_v21, %v218_v13 }
  0x23   : > { %v230_v24 = vshll.u32 %v627_v23, %v218_v13  ;;  %v233_v26 = vshll.u32 %v628_v25, %v218_v13  ;;  %vm236_vm2 = vcmp.lt.s32.totalorder %v217_v15, 1  ;;  %vm239_vm3 = vcmp.lt.s32.totalorder %v217_v15, 4 }
  0x24   : > { %v220_v27 = vshrl.u32 %v624_v17, %v219_v16  ;;  %v222_v28 = vshrl.u32 %v625_v19, %v219_v16  ;;  %v225_v29 = vshrl.u32 %v626_v21, %v219_v16  ;;  %v228_v30 = vshrl.u32 %v627_v23, %v219_v16 }
  0x25   : > { %v231_v31 = vshrl.u32 %v628_v25, %v219_v16  ;;  %v234_v33 = vshrl.u32 %v629_v32, %v219_v16  ;;  %vm237_vm4 = vcmp.lt.s32.totalorder %v217_v15, 2  ;;  %vm238_vm5 = vcmp.lt.s32.totalorder %v217_v15, 3 }
  0x26   : > { %v223_v35 = vor.u32 %v222_v28, %v221_v18  ;;  %v226_v36 = vor.u32 %v225_v29, %v224_v20  ;;  %v229_v37 = vor.u32 %v228_v30, %v227_v22 }
  0x27   : > { %v232_v38 = vor.u32 %v231_v31, %v230_v24  ;;  %v235_v39 = vor.u32 %v234_v33, %v233_v26  ;;  %v200_v24 = vsel %vm199_vm0, 0.0, %v670_v0 }
  0x28   : > { %v240_v40 = vsel %vm236_vm2, %v220_v27, %v223_v35  ;;  %v241_v41 = vsel %vm239_vm3, %v229_v37, 2102212464  ;;  %v244_v42 = vsel %vm236_vm2, %v223_v35, %v226_v36  ;;  %v248_v43 = vsel %vm236_vm2, %v226_v36, %v229_v37 }
  0x29   : > { %v242_v44 = vsel %vm238_vm5, %v226_v36, %v241_v41  ;;  %v245_v45 = vsel %vm239_vm3, %v232_v38, 920167782  ;;  %v249_v46 = vsel %vm239_vm3, %v235_v39, 1326507024  ;;  %v202_v28 = vmul.f32 1.442695, %v200_v24 }
  0x2a   : > { %v246_v47 = vsel %vm238_vm5, %v229_v37, %v245_v45  ;;  %v250_v48 = vsel %vm238_vm5, %v232_v38, %v249_v46  ;;  %v243_v49 = vsel %vm237_vm4, %v240_v40, %v242_v44  ;;  %v631_v24 = vmov 0.7853982  }
  0x2b   : > { %v247_v50 = vsel %vm237_vm4, %v244_v42, %v246_v47  ;;  %v251_v51 = vsel %vm237_vm4, %v248_v43, %v250_v48  ;;  %v259_v56 = vmul.u32 %v252_v34, %v243_v49 }
  0x2c   : > { %v690_v52 = vmul.u32.u64.low %v252_v34, %v251_v51  ;;  %v691_v53 = vmul.u32.u64.high %v252_v34, %v251_v51, %v690_v52  ;;  %v693_v54 = vmul.u32.u64.low %v252_v34, %v247_v50  ;;  %v694_v55 = vmul.u32.u64.high %v252_v34, %v247_v50, %v693_v54 }
  0x2e   : > { %vm261_vm6 = vc.u32 %v691_v53, %v693_v54  ;;  %v262_v57 = vadd.s32 1, %v694_v55  ;;  %v260_v9 = vadd.s32 %v693_v54, %v691_v53 }
  0x30   : > { %v263_v58 = vsel %vm261_vm6, %v262_v57, %v694_v55 }
  0x31   : > { %v264_v59 = vadd.s32 %v263_v58, %v259_v56 }
  0x33   : > { %v265_v60 = vadd.s32 536870912, %v264_v59 }
  0x35   : > { %v266_v61 = vshrl.u32 %v265_v60, 30 }
  0x37   : > { %v267_v62 = vshll.u32 %v266_v61, 30  ;;  %v290_v22 = vsub.s32 4, %v266_v61 }
  0x39   : > { %v268_v63 = vsub.s32 %v264_v59, %v267_v62  ;;  %v291_v26 = vsel %vm206_vm8, %v290_v22, %v266_v61 }
  0x3a   : > { %v293_v29 = vsel %vm205_vm9, 0, %v291_v26 }
  0x3b   : > { %v270_v2 = vsub.s32 0, %v268_v63  ;;  %v402_v30 = vadd.s32 3, %v293_v29  ;;  %v297_v31 = vand.u32 3, %v293_v29 }
  0x3d   : > { %v577_v3 = vmin.u32 %v270_v2, %v268_v63  ;;  %v403_v32 = vand.u32 3, %v402_v30  ;;  %vm302_vm10 = vcmp.eq.s32.totalorder %v297_v31, 2  ;;  %vm299_vm12 = vcmp.eq.s32.totalorder %v297_v31, 0 }
  0x3e   : > { %vm298_vm14 = vcmp.lt.s32.totalorder %v297_v31, 2 }
  0x3f   : > { %v272_v6 = vclz %v577_v3  ;;  %vm408_vm11 = vcmp.eq.s32.totalorder %v403_v32, 2  ;;  %vm405_vm13 = vcmp.eq.s32.totalorder %v403_v32, 0  ;;  %vm404_vm15 = vcmp.lt.s32.totalorder %v403_v32, 2 }
  0x41   : > { %v578_v7 = vadd.s32 4294967294, %v272_v6 }
  0x43   : > { %vm579_vm7 = vcmp.lt.s32.totalorder %v578_v7, 0 }
  0x44   : > { %v275_v10 = vsel %vm579_vm7, 0, %v578_v7 }
  0x45   : > { %v276_v11 = vsub.s32 32, %v275_v10  ;;  %v277_v12 = vshll.u32 %v268_v63, %v275_v10  ;;  %v280_v13 = vsub.s32 4294967266, %v275_v10 }
  0x47   : > { %v278_v14 = vshrl.u32 %v260_v9, %v276_v11  ;;  %v281_v15 = vadd.s32 127, %v280_v13 }
  0x49   : > { %v279_v16 = vor.u32 %v278_v14, %v277_v12  ;;  %v282_v17 = vshll.u32 %v281_v15, 23 }
  0x4b   : > { %v283_v18 = vor.u32 4788187, %v282_v17  ;;  %v286_v19 = vcvt.s32.f32 %v279_v16 }
  0x4d   : > { %v284_v20 = vand.u32 2147483647, %v283_v18 }
  0x4f   : > { %v287_v21 = vmul.f32 %v286_v19, %v284_v20 }
  0x51   : > { %v288_v23 = vxor.u32 2147483648, %v287_v21 }
  0x53   : > { %v289_v25 = vsel %vm206_vm8, %v288_v23, %v287_v21  ;;  %v630_v21 = vmov 0.0  }
  0x54   : > { %v292_v27 = vsel %vm205_vm9, %v684_v5, %v289_v25 }
  0x55   : > { %606 = vcosq.f32 %v292_v27 }
  0x56   : > { %608 = vsinq.f32 %v292_v27 }
  0x57   : > { %610 = vpow2.f32 %v202_v28 }
  0x62   : > { %v607_v33 = vpop.eup %606 }
  0x63   : > { %v609_v8 = vpop.eup %608  ;;  %v303_v34 = vxor.u32 2147483648, %v607_v33 }
  0x64   : > { %v300_v35 = vxor.u32 2147483648, %v609_v8  ;;  %v611_v38 = vpop.eup %610 }
  0x65   : > { %v304_v36 = vsel %vm302_vm10, %v303_v34, %v609_v8  ;;  %v410_v37 = vsel %vm408_vm11, %v303_v34, %v609_v8 }
  0x66   : > { %v301_v39 = vsel %vm299_vm12, %v607_v33, %v300_v35  ;;  %v407_v40 = vsel %vm405_vm13, %v607_v33, %v300_v35 }
  0x67   : > { %v305_v41 = vsel %vm298_vm14, %v301_v39, %v304_v36  ;;  %v411_v42 = vsel %vm404_vm15, %v407_v40, %v410_v37 }
  0x68   : > { %v306_v43 = vsel %vm296_vm1, nan, %v305_v41  ;;  %v412_v44 = vsel %vm296_vm1, nan, %v411_v42 }
  0x69   : > { %v307_v45 = vmul.f32 %v611_v38, %v306_v43  ;;  %v413_v46 = vmul.f32 %v611_v38, %v412_v44 }
  0x6b   : > { %v308_v47 = vadd.f32 1.0, %v307_v45  ;;  %v415_v48 = vmul.f32 %v413_v46, %v413_v46  ;;  %v421_v49 = vand.u32 2147483647, %v413_v46  ;;  %vm455_vm5 = vcmp.ne.f32.partialorder %v413_v46, %v413_v46 }
  0x6c   : > { %vm452_vm9 = vcmp.eq.f32.partialorder %v413_v46, 0.0  ;;  %v465_v28 = vand.u32 2147483648, %v413_v46 }
  0x6d   : > { %v414_v50 = vmul.f32 %v308_v47, %v308_v47  ;;  %v420_v51 = vand.u32 2147483647, %v308_v47  ;;  %vm450_vm3 = vcmp.lt.s32.totalorder %v308_v47, 0  ;;  %vm454_vm4 = vcmp.ne.f32.partialorder %v308_v47, %v308_v47 }
  0x6e   : > { %vm447_vm6 = vcmp.lt.f32.partialorder %v308_v47, 0.0  ;;  %vm461_vm8 = vcmp.eq.s32.totalorder %v421_v49, inf  ;;  %v451_v22 = vsel %vm450_vm3, 3.1415927, %v630_v21  ;;  %vm456_vm10 = vmor %vm454_vm4, %vm455_vm5 }
  0x6f   : > { %v416_v52 = vadd.f32 %v415_v48, %v414_v50  ;;  %v423_v53 = vmax.f32 %v420_v51, %v421_v49  ;;  %v422_v5 = vmin.f32 %v420_v51, %v421_v49  ;;  %vm444_vm2 = vcmp.gt.f32.partialorder %v421_v49, %v420_v51 }
  0x70   : > { %vm460_vm7 = vcmp.eq.s32.totalorder %v420_v51, inf  ;;  %v459_v25 = vsel %vm447_vm6, 2.3561945, %v631_v24 }
  0x71   : > { %612 = vlog2.f32 %v416_v52  ;;  %vm462_vm11 = vmand %vm460_vm7, %vm461_vm8 }
  0x72   : > { %614 = vrcp.f32 %v423_v53 }
  0x7e   : > { %v613_v54 = vpop.eup %612 }
  0x7f   : > { %v615_v55 = vpop.eup %614  ;;  %v418_v56 = vmul.f32 0.6931472, %v613_v54 }
  0x80   : > { %v425_v57 = vmul.f32 %v615_v55, %v422_v5 }
  0x81   : > { %v419_v58 = vmul.f32 0.5, %v418_v56 }
  0x82   : > { %v426_v59 = vmul.f32 %v425_v57, %v425_v57 }
  0x83   : > { %v467_v60 = vsel %vm199_vm0, %v670_v0, %v419_v58 }
  0x84   : > { %v427_v61 = vmul.f32 0.002785687, %v426_v59  ;;  %468 = vst [vmem:[%s189_s23] sm:$0xff] %v467_v60 }
  0x86   : > { %v428_v62 = vadd.f32 -0.015866, %v427_v61 }
  0x88   : > { %v429_v63 = vmul.f32 %v428_v62, %v426_v59 }
  0x8a   : > { %v430_v2 = vadd.f32 0.04247222, %v429_v63 }
  0x8c   : > { %v431_v3 = vmul.f32 %v430_v2, %v426_v59 }
  0x8e   : > { %v432_v6 = vadd.f32 -0.074975304, %v431_v3 }
  0x90   : > { %v433_v7 = vmul.f32 %v432_v6, %v426_v59 }
  0x92   : > { %v434_v9 = vadd.f32 0.1064488, %v433_v7 }
  0x94   : > { %v435_v10 = vmul.f32 %v434_v9, %v426_v59 }
  0x96   : > { %v436_v11 = vadd.f32 -0.14207031, %v435_v10 }
  0x98   : > { %v437_v12 = vmul.f32 %v436_v11, %v426_v59 }
  0x9a   : > { %v438_v13 = vadd.f32 0.19993454, %v437_v12 }
  0x9c   : > { %v439_v14 = vmul.f32 %v438_v13, %v426_v59 }
  0x9e   : > { %v440_v15 = vadd.f32 -0.33333147, %v439_v14 }
  0xa0   : > { %v441_v16 = vmul.f32 %v440_v15, %v426_v59 }
  0xa2   : > { %v442_v17 = vmul.f32 %v441_v16, %v425_v57 }
  0xa4   : > { %v443_v18 = vadd.f32 %v442_v17, %v425_v57 }
  0xa6   : > { %v445_v0 = vsub.f32 1.5707964, %v443_v18 }
  0xa8   : > { %v446_v19 = vsel %vm444_vm2, %v445_v0, %v443_v18 }
  0xa9   : > { %v448_v20 = vsub.f32 3.1415927, %v446_v19 }
  0xab   : > { %v449_v23 = vsel %vm447_vm6, %v448_v20, %v446_v19 }
  0xac   : > { %v453_v26 = vsel %vm452_vm9, %v451_v22, %v449_v23 }
  0xad   : > { %v457_v27 = vsel %vm456_vm10, nan, %v453_v26 }
  0xae   : > { %v463_v29 = vsel %vm462_vm11, %v459_v25, %v457_v27 }
  0xaf   : > { %v464_v30 = vand.u32 2147483647, %v463_v29 }
  0xb1   : > { %v466_v31 = vor.u32 %v465_v28, %v464_v30 }
  0xb3   : > { %v469_v32 = vsel %vm199_vm0, %v672_v1, %v466_v31 }
  0xb4   : > { %470 = vst [vmem:[%s193_s26] sm:$0xff] %v469_v32 }
  0xb5 PF: > { %s14_s12 = sadd.s32 1, %s622_s12  }
  0xb6   : > { %p11_p4 = scmp.ge.s32.totalorder %s14_s12, 4  }
  0xb8   :  { %13 = sbr.rel (!%p11_p4) target bundleno = 1 (0x1), region = 73 }

</bundles_post_ra>
